<compile_context>
chip_gen: v6e
topology: v6e:2x2x1
jax: 0.10.0
libtpu: 0.0.40
codegen_flags: <defaults>
</compile_context>

<pallas_src>
import functools
import math

import jax
import jax.numpy as jnp
from jax.experimental import pallas as pl
from jax.experimental.pallas import tpu as pltpu


def _pad_kernel(x_ref, o_ref, *, pad_left, pad_right, t_in):
    """One (rows_tile, t_in) -> (rows_tile, t_out) step.

    pad_left / pad_right / t_in are static Python ints, so all branches below
    resolve at trace time.  Every output element of the tile is written each
    step, so no stale VMEM can leak to HBM.
    """
    rows = o_ref.shape[0]
    dt = o_ref.dtype

    if pad_left % 128 == 0:
        # Lane-aligned fast path (includes pad_left == 0): the interior store
        # starts on a lane boundary, so keep the 3-store form -- the bulk of
        # the bytes goes out as dense stores with no in-register realignment.
        if pad_left > 0:
            o_ref[:, :pad_left] = jnp.zeros((rows, pad_left), dtype=dt)
        if pad_right > 0:
            o_ref[:, pad_left + t_in:] = jnp.zeros((rows, pad_right), dtype=dt)
        o_ref[:, pad_left:pad_left + t_in] = x_ref[...]
    else:
        # Lane-misaligned pad_left: a sub-slice interior store would become
        # masked vst.msk partial stores on the single (binding) store slot.
        # Instead build the full-width output tile in registers -- the lane
        # realignment is done by the XLU/VPU (free slots here) -- and emit
        # ONE full-width unmasked store.
        x = x_ref[...]
        parts = []
        if pad_left > 0:
            parts.append(jnp.zeros((rows, pad_left), dtype=dt))
        parts.append(x)
        if pad_right > 0:
            parts.append(jnp.zeros((rows, pad_right), dtype=dt))
        o_ref[...] = jnp.concatenate(parts, axis=-1)


def _sublane_quantum(dtype):
    """Rows per packed vreg row-group: 8 (32-bit), 16 (16-bit), 32 (8-bit)."""
    return max(8, 32 // jnp.dtype(dtype).itemsize)


def _choose_row_tile(n_rows, quantum, bytes_per_row, target_bytes=4 << 20):
    """Row tile that is a multiple of the dtype's sublane quantum, divides
    n_rows exactly (the wrapper pads n_rows up to the quantum), and keeps one
    (input + output) tile pair around `target_bytes` so the double-buffered
    working set stays well under every chip's scoped-VMEM default."""
    max_rows = max(quantum,
                   (target_bytes // max(bytes_per_row, 1)) // quantum * quantum)
    tr = min(n_rows, max_rows)
    while n_rows % tr != 0:  # terminates at `quantum`, which divides n_rows
        tr -= quantum
    return tr


def pallas_pad(x, pad):
    """Zero-pad the last axis of `x`, like F.pad(x, pad=(left, right))."""
    # TODO(synk): negative pads (cropping) and pad tuples covering more than
    # the last dim are not handled.
    assert len(pad) == 2
    pad_left, pad_right = int(pad[0]), int(pad[1])
    assert pad_left >= 0 and pad_right >= 0

    if pad_left == 0 and pad_right == 0:
        return x  # no-op fast path: skip the HBM round trip entirely

    orig_shape = x.shape
    t_in = orig_shape[-1]
    t_out = t_in + pad_left + pad_right
    n_rows = math.prod(orig_shape[:-1]) if len(orig_shape) > 1 else 1

    # Flatten leading dims into one dense row axis: (B, C, T) -> (B*C, T).
    # Row-major collapse, free in XLA; gives dense vreg tiles instead of
    # (1, C, T) slabs with a tiny sublane dim.
    x2 = x.reshape(n_rows, t_in)

    itemsize = jnp.dtype(x.dtype).itemsize
    quantum = _sublane_quantum(x.dtype)

    # Pad the row axis up to the sublane quantum so every tile is a dense,
    # quantum-multiple block and the grid keeps pipelining (instead of the
    # old single-giant-block fallback when n_rows % 8 != 0).
    n_rows_p = pl.cdiv(n_rows, quantum) * quantum
    if n_rows_p != n_rows:
        x2 = jnp.pad(x2, ((0, n_rows_p - n_rows), (0, 0)))

    tr = _choose_row_tile(n_rows_p, quantum, (t_in + t_out) * itemsize)
    grid = (n_rows_p // tr,)
    # TODO(synk): add a time-tile grid axis for extreme T where even a
    # quantum-row, full-T tile pair would not fit the VMEM budget.

    # Double-buffered (input + output) working set; raise scoped VMEM only if
    # needed, capped at v7x's 64 MiB physical VMEM.
    tile_pair_bytes = tr * (t_in + t_out) * itemsize
    vmem_limit = int(min(max(32 << 20, 2 * tile_pair_bytes + (2 << 20)), 64 << 20))

    kernel = functools.partial(
        _pad_kernel, pad_left=pad_left, pad_right=pad_right, t_in=t_in)

    out2 = pl.pallas_call(
        kernel,
        out_shape=jax.ShapeDtypeStruct((n_rows_p, t_out), x.dtype),
        grid=grid,
        in_specs=[pl.BlockSpec((tr, t_in), lambda i: (i, 0))],
        out_specs=pl.BlockSpec((tr, t_out), lambda i: (i, 0)),
        compiler_params=pltpu.CompilerParams(
            # Row tiles are independent -> v7x megacore can shard them.
            dimension_semantics=("parallel",),
            vmem_limit_bytes=vmem_limit),
        cost_estimate=pl.CostEstimate(
            flops=0, transcendentals=0,
            bytes_accessed=int(n_rows_p * (t_in + t_out) * itemsize)),
    )(x2)

    if n_rows_p != n_rows:
        out2 = out2[:n_rows]
    return out2.reshape(*orig_shape[:-1], t_out)


if __name__ == "__main__":
    key = jax.random.PRNGKey(0)

    # Main check: lane-misaligned pad (pad_left % 128 != 0) -> full-tile path.
    B, C, T = 2, 4, 16
    pad = (2, 3)  # the `pad` argument of Pad(pad): (left, right) on the last axis
    x = jax.random.normal(key, (B, C, T), dtype=jnp.float32)
    out = jax.block_until_ready(pallas_pad(x, pad))
    ref = jnp.pad(x, ((0, 0), (0, 0), (pad[0], pad[1])))
    assert out.shape == ref.shape, (out.shape, ref.shape)
    assert out.dtype == x.dtype
    assert jnp.allclose(out, ref), "mismatch vs jnp.pad reference (misaligned path)"

    # Secondary check: lane-aligned fast path (pad_left == 0), non-multiple
    # row count (3*7 = 21 rows) and packed dtype (bf16, quantum = 16).
    x2 = jax.random.normal(key, (3, 7, 16), dtype=jnp.bfloat16)
    out2 = jax.block_until_ready(pallas_pad(x2, (0, 5)))
    ref2 = jnp.pad(x2, ((0, 0), (0, 0), (0, 5)))
    assert out2.shape == ref2.shape and out2.dtype == x2.dtype
    assert jnp.allclose(out2.astype(jnp.float32), ref2.astype(jnp.float32)), \
        "mismatch vs jnp.pad reference (aligned path)"

    print("KERNEL_OK")
</pallas_src>

<mosaic_0001>
module attributes {stable_mosaic.version = 11 : i64} {
  func.func @_pad_kernel(%arg0: i32, %arg1: memref<8x16xf32, #tpu.memory_space<vmem>>, %arg2: memref<8x21xf32, #tpu.memory_space<vmem>>) attributes {dimension_semantics = [#tpu.dimension_semantics<parallel>], iteration_bounds = array<i64: 1>, scalar_prefetch = 0 : i64, scratch_operands = 0 : i64, tpu.core_type = #tpu.core_type<tc>, window_params = [{transform_indices = @transform_0, window_bounds = array<i64: 8, 16>}, {transform_indices = @transform_1, window_bounds = array<i64: 8, 21>}]} {
    %c0 = arith.constant 0 : index
    %c0_0 = arith.constant 0 : index
    %0 = vector.load %arg1[%c0, %c0_0] : memref<8x16xf32, #tpu.memory_space<vmem>>, vector<8x16xf32>
    %cst = arith.constant 0.000000e+00 : f32
    %1 = vector.broadcast %cst : f32 to vector<8x2xf32>
    %cst_1 = arith.constant 0.000000e+00 : f32
    %2 = vector.broadcast %cst_1 : f32 to vector<8x3xf32>
    %3 = tpu.concatenate %1, %0, %2 in 1 : vector<8x2xf32>, vector<8x16xf32>, vector<8x3xf32> -> vector<8x21xf32>
    %c0_2 = arith.constant 0 : index
    %c0_3 = arith.constant 0 : index
    %4 = vector.load %arg2[%c0_2, %c0_3] : memref<8x21xf32, #tpu.memory_space<vmem>>, vector<8x21xf32>
    tpu.vector_store %arg2[%c0_2, %c0_3], %3 {strides = array<i32>} : memref<8x21xf32, #tpu.memory_space<vmem>>, vector<8x21xf32>,
    return
  }
  func.func @transform_0(%arg0: i32) -> (i32, i32) {
    %c0_i32 = arith.constant 0 : i32
    %c0_i32_0 = arith.constant 0 : i32
    return %arg0, %c0_i32 : i32, i32
  }
  func.func @transform_1(%arg0: i32) -> (i32, i32) {
    %c0_i32 = arith.constant 0 : i32
    %c0_i32_0 = arith.constant 0 : i32
    return %arg0, %c0_i32 : i32, i32
  }
}

</mosaic_0001>

<bundles_post_ra>
// kernel: tpu_custom_call.1
= control target key start
LH: loop header
LB: loop body
LE: loop exit
PB: predicated region body
PF: predicated region fallthrough
CT: control target
= control target key end

     0   :  { %6 = vsyncpa [#allocation3], 0  ;;  %s113_s0 = inlined_call_operand.hbm [shape: f32[8,16], index: 0, kind: input, shape index: {}]   ;;  %s114_s1 = inlined_call_operand.hbm [shape: f32[8,21], index: 1, kind: output, shape index: {}]  }
   0x1   :  { %7 = vsyncpa [#allocation4], 0  ;;  %s94_s6 = smov [#allocation2]  }
   0x2   :  { %s14_s7 = sshll.u32 %s94_s6, 4  ;;  %s15_s7 = int_to_ptr.vmem [resolvable:$true] %s14_s7 }
   0x3   :  { %s58_s8 = scalar_lea.vmem %s15_s7, 128  ;;  %p63_p1 = scmp.lt.s32.totalorder %s15_s7, %s15_s7 }
   0x4   :  { %p59_p0 = scmp.ne.s32.totalorder %s15_s7, %s58_s8  ;;  %p64_p2 = scmp.lt.s32.totalorder %s58_s8, %s58_s8 }
   0x6   :  { %p65_p3 = por %p64_p2, %p63_p1 }
   0x8   :  { %p66_p4 = pnand %p65_p3, %p59_p0 }
   0xa   :  { %69 = shalt.err (!%p66_p4)
}
   0xb   :  { %17 = dma.hbm_to_vmem [thread:$0]  %s113_s0, 128, %s15_s7, [#allocation3]  }
   0xc   :  { %90 = dma.done.wait [#allocation3], 128  }
   0xd   :  { %91 = vsyncadd [#allocation3], 4294967168  ;;  %v21_v0 = vld [vmem:[#allocation2] sm:$0xff]  ;;  %s95_s11 = smov 2   ;;  %vm26_vm0 = vcmask 15360   ;;  %s96_s12 = smov [#allocation5]  }
   0xe   :  { %23 = vrot.lane.b32.xlu0 %v21_v0, %s95_s11  ;;  %s38_s13 = sshll.u32 %s96_s12, 4  ;;  %vm28_vm1 = vcmask 146432   ;;  %vm30_vm2 = vcmask 171008   ;;  %s39_s13 = int_to_ptr.vmem [resolvable:$true] %s38_s13 }
   0xf   :  { %s70_s14 = scalar_lea.vmem %s39_s13, 128  ;;  %p75_p6 = scmp.lt.s32.totalorder %s39_s13, %s39_s13 }
  0x10   :  { %p71_p5 = scmp.ne.s32.totalorder %s39_s13, %s70_s14  ;;  %p76_p7 = scmp.lt.s32.totalorder %s70_s14, %s70_s14 }
  0x12   :  { %p77_p8 = por %p76_p7, %p75_p6 }
  0x14   :  { %p78_p9 = pnand %p77_p8, %p71_p5 }
  0x80   :  { %v24_v1 = vpop.permute.xlu0 %23 }
  0x81   :  { %v27_v2 = vsel %vm26_vm0, 0.0, %v24_v1 }
  0x82   :  { %v29_v3 = vsel %vm28_vm1, %v27_v2, 0.0 }
  0x83   :  { %31 = vst.msk [vmem:[#allocation5] sm:$0xff] %vm30_vm2, %v29_v3 }
  0x84   :  { %81 = shalt.err (!%p78_p9)
}
  0x85   :  { %41 = dma.vmem_to_hbm [thread:$0]  %s39_s13, 128, %s114_s1, [#allocation4]  }
  0x86   :  { %92 = dma.done.wait [#allocation4], 128  }
  0x87   :  { %93 = vsyncadd [#allocation4], 4294967168 }
  0x88   :  { %45 = vsyncpa [#allocation3], 1 }
  0x89   :  { %46 = vsyncpa [#allocation4], 1 }

</bundles_post_ra>
